<compile_context>
chip_gen: v7x
topology: tpu7x:2x2x1
jax: 0.10.0
libtpu: 0.0.40
codegen_flags: <defaults>
</compile_context>

<pallas_src>
import jax
import jax.numpy as jnp
from jax.experimental import pallas as pl
from jax.experimental.pallas import tpu as pltpu

_LANE = 128
_OUT_DTYPE = jnp.float32  # set to jnp.bfloat16 if the consumer takes bf16 tokens


# ----------------------------- tiling helpers -------------------------------


def _padded_row_bytes(inner_dims, itemsize=4):
    """VMEM bytes one batch row of a blocked tile occupies (lane-padded to 128)."""
    lead = 1
    for d in inner_dims[:-1]:
        lead *= d
    return lead * (-(-inner_dims[-1] // _LANE)) * _LANE * itemsize


def _pick_batch_block(b, row_bytes, *, vmem_budget=32 << 20, max_block=8192):
    """Pick the batch tile.

    * sized so double-buffered streamed tiles stay inside `vmem_budget`;
    * multiple of 8 (sublane rule) unless the whole batch is one block;
    * >= 2 grid steps whenever the batch allows it, so the "parallel" batch
      axis can shard across the two TensorCores on v7x;
    * prefers an exact divisor of B; otherwise the last grid step is a
      partial block (Pallas pads reads / clips writes).
    """
    cap = min(max_block, max(8, (vmem_budget // (2 * row_bytes)) // 8 * 8))
    if b <= 8:
        return b
    if b % 8 != 0 and b <= cap:
        return b  # only legal non-8-aligned block is the full batch
    target = max(8, min(cap, (b // 2) // 8 * 8))
    for cand in range(target, 7, -8):  # largest multiple of 8 <= target dividing B
        if b % cand == 0:
            return cand
    return target  # no exact divisor: partial last block via pl.cdiv grid


def _compiler_params(b_blk, row_bytes, const_bytes):
    vmem_limit = int(min(2 * b_blk * row_bytes + const_bytes + (8 << 20), 64 << 20))
    return pltpu.CompilerParams(
        dimension_semantics=("parallel",),
        vmem_limit_bytes=vmem_limit,
    )


def _vmem_const_spec():
    # Whole operand resident in VMEM for the call: not grid-blocked, so it is
    # not double-buffered like pipelined inputs (halves constant footprint).
    return pl.BlockSpec(memory_space=pltpu.MemorySpace.VMEM)


# --------------------------------- kernels -----------------------------------


def _tokenizer_kernel(xnum_ref, xcat_ref, w1_ref, b1_ref, rhs_ref, bias_ref,
                      onum_ref, ocat_ref):
    b_blk, n_cat = xcat_ref.shape
    e = w1_ref.shape[1]
    v_total = rhs_ref.shape[0] - e

    # SimpleMLP first layer (MXU, f32 accumulation).
    h = jnp.dot(xnum_ref[...], w1_ref[...], preferred_element_type=jnp.float32)
    h = jnp.maximum(h + b1_ref[...], 0.0)

    # Combined one-hot over the concatenated vocabularies (indices were
    # pre-shifted by per-column offsets in the wrapper).  Iota hoisted out of
    # the statically unrolled per-column loop; static lane slices only.
    iota = jax.lax.broadcasted_iota(jnp.int32, (b_blk, v_total), 1)
    xcat = xcat_ref[...]
    onehot = jnp.zeros((b_blk, v_total), jnp.float32)
    for i in range(n_cat):
        onehot = onehot + (iota == xcat[:, i:i + 1]).astype(jnp.float32)

    # Block-diagonal fused RHS = [w2 | table_0 | ... | table_{n_cat-1}].
    # Two lane-dense N=(n_cat+1)*E matmuls -> one (b_blk, (n_cat+1)*E) slab.
    slab = jnp.dot(h, rhs_ref[:e, :], preferred_element_type=jnp.float32)
    slab = slab + jnp.dot(onehot, rhs_ref[e:, :],
                          preferred_element_type=jnp.float32)
    slab = slab + bias_ref[...]

    # Write the two module outputs directly (no post-kernel slab splitting).
    onum_ref[...] = slab[:, :e].reshape(b_blk, 1, e).astype(onum_ref.dtype)
    for i in range(n_cat):  # static lane offsets
        ocat_ref[:, i, :] = slab[:, (i + 1) * e:(i + 2) * e].astype(ocat_ref.dtype)


def _mlp_only_kernel(xnum_ref, w1_ref, b1_ref, w2_ref, b2_ref, o_ref):
    b_blk = xnum_ref.shape[0]
    e = w2_ref.shape[1]
    h = jnp.dot(xnum_ref[...], w1_ref[...], preferred_element_type=jnp.float32)
    h = jnp.maximum(h + b1_ref[...], 0.0)
    y = jnp.dot(h, w2_ref[...], preferred_element_type=jnp.float32) + b2_ref[...]
    o_ref[...] = y.reshape(b_blk, 1, e).astype(o_ref.dtype)


def _embed_only_kernel(xcat_ref, tables_ref, o_ref):
    b_blk, n_cat = xcat_ref.shape
    v_total, _ = tables_ref.shape
    iota = jax.lax.broadcasted_iota(jnp.int32, (b_blk, v_total), 1)
    xcat = xcat_ref[...]
    for i in range(n_cat):  # static unrolled loop, indices pre-shifted
        onehot = (iota == xcat[:, i:i + 1]).astype(jnp.float32)
        emb = jnp.dot(onehot, tables_ref[...], preferred_element_type=jnp.float32)
        o_ref[:, i, :] = emb.astype(o_ref.dtype)


# ------------------------------ JAX wrappers ---------------------------------


@jax.jit
def tokenizer_fused(x_num, x_cat, params):
    b, n_num = x_num.shape
    n_cat = x_cat.shape[1]
    e = params["w1"].shape[1]
    consts = (params["w1"], params["b1"], params["fused_rhs"], params["fused_bias"])

    row_bytes = (_padded_row_bytes((n_num,)) + _padded_row_bytes((n_cat,))
                 + _padded_row_bytes((1, e)) + _padded_row_bytes((n_cat, e)))
    b_blk = _pick_batch_block(b, row_bytes)
    const_bytes = sum(2 * int(a.size) * a.dtype.itemsize for a in consts)

    x_cat_shifted = x_cat.astype(jnp.int32) + params["cat_offsets"][None, :]

    out_num, out_cat = pl.pallas_call(
        _tokenizer_kernel,
        out_shape=(jax.ShapeDtypeStruct((b, 1, e), _OUT_DTYPE),
                   jax.ShapeDtypeStruct((b, n_cat, e), _OUT_DTYPE)),
        grid=(pl.cdiv(b, b_blk),),
        in_specs=[
            pl.BlockSpec((b_blk, n_num), lambda i: (i, 0)),
            pl.BlockSpec((b_blk, n_cat), lambda i: (i, 0)),
            _vmem_const_spec(),  # w1
            _vmem_const_spec(),  # b1
            _vmem_const_spec(),  # fused_rhs (block-diag [w2 | tables])
            _vmem_const_spec(),  # fused_bias
        ],
        out_specs=(
            pl.BlockSpec((b_blk, 1, e), lambda i: (i, 0, 0)),
            pl.BlockSpec((b_blk, n_cat, e), lambda i: (i, 0, 0)),
        ),
        compiler_params=_compiler_params(b_blk, row_bytes, const_bytes),
    )(x_num, x_cat_shifted, *consts)
    return out_num, out_cat


@jax.jit
def mlp_embed(x_num, params):
    b, n_num = x_num.shape
    e = params["w1"].shape[1]
    consts = (params["w1"], params["b1"], params["w2"], params["b2"])
    row_bytes = _padded_row_bytes((n_num,)) + _padded_row_bytes((1, e))
    b_blk = _pick_batch_block(b, row_bytes)
    const_bytes = sum(2 * int(a.size) * a.dtype.itemsize for a in consts)
    return pl.pallas_call(
        _mlp_only_kernel,
        out_shape=jax.ShapeDtypeStruct((b, 1, e), _OUT_DTYPE),
        grid=(pl.cdiv(b, b_blk),),
        in_specs=[pl.BlockSpec((b_blk, n_num), lambda i: (i, 0))]
                + [_vmem_const_spec() for _ in range(4)],
        out_specs=pl.BlockSpec((b_blk, 1, e), lambda i: (i, 0, 0)),
        compiler_params=_compiler_params(b_blk, row_bytes, const_bytes),
    )(x_num, *consts)


@jax.jit
def cat_embed(x_cat, params):
    b, n_cat = x_cat.shape
    _, e = params["packed_tables"].shape
    row_bytes = _padded_row_bytes((n_cat,)) + _padded_row_bytes((n_cat, e))
    b_blk = _pick_batch_block(b, row_bytes)
    const_bytes = 2 * int(params["packed_tables"].size) * 4
    x_cat_shifted = x_cat.astype(jnp.int32) + params["cat_offsets"][None, :]
    return pl.pallas_call(
        _embed_only_kernel,
        out_shape=jax.ShapeDtypeStruct((b, n_cat, e), _OUT_DTYPE),
        grid=(pl.cdiv(b, b_blk),),
        in_specs=[pl.BlockSpec((b_blk, n_cat), lambda i: (i, 0)),
                  _vmem_const_spec()],
        out_specs=pl.BlockSpec((b_blk, n_cat, e), lambda i: (i, 0, 0)),
        compiler_params=_compiler_params(b_blk, row_bytes, const_bytes),
    )(x_cat_shifted, params["packed_tables"])


def tokenizer_forward(x_num, x_cat, params):
    """Mirror of Tokenizer.forward(x_num, x_cat)."""
    if x_num is not None and x_cat is not None:
        return tokenizer_fused(x_num, x_cat, params)
    x_num_emb = mlp_embed(x_num, params) if x_num is not None else None
    x_cats = cat_embed(x_cat, params) if x_cat is not None else None
    return x_num_emb, x_cats


# -------------------------------- parameters ---------------------------------


def init_params(key, n_num, categories, embed_dim):
    """PyTorch-Tokenizer-equivalent parameters + kernel-ready fused constants."""
    k1, k2, k3, k4, k5 = jax.random.split(key, 5)
    # SimpleMLP: Linear(n_num,E) -> ReLU -> Linear(E,E); weights stored (in,out).
    w1 = jax.random.normal(k1, (n_num, embed_dim), jnp.float32) * 0.1
    b1 = jax.random.normal(k2, (1, embed_dim), jnp.float32) * 0.1
    w2 = jax.random.normal(k3, (embed_dim, embed_dim), jnp.float32) * 0.1
    b2 = jax.random.normal(k4, (1, embed_dim), jnp.float32) * 0.1
    tkeys = jax.random.split(k5, len(categories))
    tables = [jax.random.normal(tkeys[i], (c, embed_dim), jnp.float32)
              for i, c in enumerate(categories)]

    n_cat = len(categories)
    v_total = int(sum(categories))
    offsets, off = [], 0
    for c in categories:
        offsets.append(off)
        off += int(c)
    packed_tables = jnp.concatenate(tables, axis=0)            # (V_total, E)

    # Block-diagonal fused RHS [w2 | table_0 | ... | table_{n_cat-1}]:
    # row 0..E -> output cols 0..E, row E+off_i+v -> output block i+1.
    width = (n_cat + 1) * embed_dim
    fused_rhs = jnp.zeros((embed_dim + v_total, width), jnp.float32)
    fused_rhs = fused_rhs.at[:embed_dim, :embed_dim].set(w2)
    for i, c in enumerate(categories):
        r0 = embed_dim + offsets[i]
        c0 = (i + 1) * embed_dim
        fused_rhs = fused_rhs.at[r0:r0 + c, c0:c0 + embed_dim].set(tables[i])
    fused_bias = jnp.concatenate(
        [b2, jnp.zeros((1, n_cat * embed_dim), jnp.float32)], axis=1)

    return {
        "w1": w1, "b1": b1, "w2": w2, "b2": b2,
        "packed_tables": packed_tables,
        "cat_offsets": jnp.asarray(offsets, jnp.int32),
        "fused_rhs": fused_rhs,
        "fused_bias": fused_bias,
    }


# ----------------------------------- main -------------------------------------


if __name__ == "__main__":
    B = 2
    n_num = 4
    categories = (5, 7, 3)
    embed_dim = 32
    n_cat = len(categories)

    key = jax.random.PRNGKey(0)
    kp, kx, kc = jax.random.split(key, 3)

    params = init_params(kp, n_num, categories, embed_dim)
    x_num = jax.random.normal(kx, (B, n_num), jnp.float32)
    x_cat = jnp.stack(
        [jax.random.randint(jax.random.fold_in(kc, i), (B,), 0, c, jnp.int32)
         for i, c in enumerate(categories)],
        axis=1,
    )  # (B, n_cat)

    x_num_emb, x_cats = tokenizer_forward(x_num, x_cat, params)
    jax.block_until_ready((x_num_emb, x_cats))

    # Pure-JAX reference (same semantics as the PyTorch module).
    ref_h = jnp.maximum(x_num @ params["w1"] + params["b1"], 0.0)
    ref_num = (ref_h @ params["w2"] + params["b2"])[:, None, :]
    ref_cats = jnp.stack(
        [params["packed_tables"][x_cat[:, i] + params["cat_offsets"][i]]
         for i in range(n_cat)],
        axis=1,
    )
    assert x_num_emb.shape == (B, 1, embed_dim)
    assert x_cats.shape == (B, n_cat, embed_dim)
    assert jnp.allclose(x_num_emb.astype(jnp.float32), ref_num, atol=1e-5)
    assert jnp.allclose(x_cats.astype(jnp.float32), ref_cats, atol=1e-5)

    # Also exercise the x_num-only / x_cat-only branches of the module.
    num_only, none_cats = tokenizer_forward(x_num, None, params)
    none_num, cat_only = tokenizer_forward(None, x_cat, params)
    jax.block_until_ready((num_only, cat_only))
    assert none_cats is None and none_num is None
    assert jnp.allclose(num_only.astype(jnp.float32), ref_num, atol=1e-5)
    assert jnp.allclose(cat_only.astype(jnp.float32), ref_cats, atol=1e-5)

    print("KERNEL_OK")
</pallas_src>

<mosaic_0001>
module attributes {stable_mosaic.version = 11 : i64} {
  func.func @_tokenizer_kernel(%arg0: i32, %arg1: memref<2x4xf32, #tpu.memory_space<vmem>>, %arg2: memref<2x3xi32, #tpu.memory_space<vmem>>, %arg3: memref<4x32xf32, #tpu.memory_space<vmem>>, %arg4: memref<1x32xf32, #tpu.memory_space<vmem>>, %arg5: memref<47x128xf32, #tpu.memory_space<vmem>>, %arg6: memref<1x128xf32, #tpu.memory_space<vmem>>, %arg7: memref<2x1x32xf32, #tpu.memory_space<vmem>>, %arg8: memref<2x3x32xf32, #tpu.memory_space<vmem>>) attributes {dimension_semantics = [#tpu.dimension_semantics<parallel>], iteration_bounds = array<i64: 1>, scalar_prefetch = 0 : i64, scratch_operands = 0 : i64, tpu.core_type = #tpu.core_type<tc>, window_params = [{transform_indices = @transform_0, window_bounds = array<i64: 2, 4>}, {transform_indices = @transform_1, window_bounds = array<i64: 2, 3>}, {pipeline_mode = #tpu.pipeline_mode<synchronous>, transform_indices = @transform_2, window_bounds = array<i64: 4, 32>}, {pipeline_mode = #tpu.pipeline_mode<synchronous>, transform_indices = @transform_3, window_bounds = array<i64: 1, 32>}, {pipeline_mode = #tpu.pipeline_mode<synchronous>, transform_indices = @transform_4, window_bounds = array<i64: 47, 128>}, {pipeline_mode = #tpu.pipeline_mode<synchronous>, transform_indices = @transform_5, window_bounds = array<i64: 1, 128>}, {transform_indices = @transform_6, window_bounds = array<i64: 2, 1, 32>}, {transform_indices = @transform_7, window_bounds = array<i64: 2, 3, 32>}]} {
    %c0 = arith.constant 0 : index
    %c0_0 = arith.constant 0 : index
    %0 = vector.load %arg1[%c0, %c0_0] : memref<2x4xf32, #tpu.memory_space<vmem>>, vector<2x4xf32>
    %c0_1 = arith.constant 0 : index
    %c0_2 = arith.constant 0 : index
    %1 = vector.load %arg3[%c0_1, %c0_2] : memref<4x32xf32, #tpu.memory_space<vmem>>, vector<4x32xf32>
    %cst = arith.constant dense<0.000000e+00> : vector<2x32xf32>
    %2 = tpu.matmul %0, %1, %cst {dimension_numbers = #tpu.dot_dimension_numbers<[1], [0], [0], [1], [0, 0, 1, 1], [], []>} : vector<2x4xf32>, vector<4x32xf32>, vector<2x32xf32> -> vector<2x32xf32>
    %c0_3 = arith.constant 0 : index
    %c0_4 = arith.constant 0 : index
    %3 = vector.load %arg4[%c0_3, %c0_4] : memref<1x32xf32, #tpu.memory_space<vmem>>, vector<1x32xf32>
    %4 = vector.broadcast %3 : vector<1x32xf32> to vector<2x32xf32>
    %5 = arith.addf %2, %4 : vector<2x32xf32>
    %cst_5 = arith.constant 0.000000e+00 : f32
    %6 = vector.broadcast %cst_5 : f32 to vector<2x32xf32>
    %7 = arith.maximumf %5, %6 : vector<2x32xf32>
    %8 = tpu.iota {dimensions = array<i32: 1>} : vector<2x15xi32>
    %c0_6 = arith.constant 0 : index
    %c0_7 = arith.constant 0 : index
    %9 = vector.load %arg2[%c0_6, %c0_7] : memref<2x3xi32, #tpu.memory_space<vmem>>, vector<2x3xi32>
    %cst_8 = arith.constant 0.000000e+00 : f32
    %10 = vector.broadcast %cst_8 : f32 to vector<2x15xf32>
    %11 = vector.extract_strided_slice %9 {offsets = [0, 0], sizes = [2, 1], strides = [1, 1]} : vector<2x3xi32> to vector<2x1xi32>
    %12 = vector.broadcast %11 : vector<2x1xi32> to vector<2x15xi32>
    %13 = arith.cmpi eq, %8, %12 : vector<2x15xi32>
    %14 = arith.extui %13 : vector<2x15xi1> to vector<2x15xi32>
    %15 = arith.sitofp %14 : vector<2x15xi32> to vector<2x15xf32>
    %16 = arith.addf %10, %15 : vector<2x15xf32>
    %17 = vector.extract_strided_slice %9 {offsets = [0, 1], sizes = [2, 1], strides = [1, 1]} : vector<2x3xi32> to vector<2x1xi32>
    %18 = vector.broadcast %17 : vector<2x1xi32> to vector<2x15xi32>
    %19 = arith.cmpi eq, %8, %18 : vector<2x15xi32>
    %20 = arith.extui %19 : vector<2x15xi1> to vector<2x15xi32>
    %21 = arith.sitofp %20 : vector<2x15xi32> to vector<2x15xf32>
    %22 = arith.addf %16, %21 : vector<2x15xf32>
    %23 = vector.extract_strided_slice %9 {offsets = [0, 2], sizes = [2, 1], strides = [1, 1]} : vector<2x3xi32> to vector<2x1xi32>
    %24 = vector.broadcast %23 : vector<2x1xi32> to vector<2x15xi32>
    %25 = arith.cmpi eq, %8, %24 : vector<2x15xi32>
    %26 = arith.extui %25 : vector<2x15xi1> to vector<2x15xi32>
    %27 = arith.sitofp %26 : vector<2x15xi32> to vector<2x15xf32>
    %28 = arith.addf %22, %27 : vector<2x15xf32>
    %c0_9 = arith.constant 0 : index
    %c0_10 = arith.constant 0 : index
    %29 = vector.load %arg5[%c0_9, %c0_10] : memref<47x128xf32, #tpu.memory_space<vmem>>, vector<32x128xf32>
    %cst_11 = arith.constant dense<0.000000e+00> : vector<2x128xf32>
    %30 = tpu.matmul %7, %29, %cst_11 {dimension_numbers = #tpu.dot_dimension_numbers<[1], [0], [0], [1], [0, 0, 1, 1], [], []>} : vector<2x32xf32>, vector<32x128xf32>, vector<2x128xf32> -> vector<2x128xf32>
    %c32 = arith.constant 32 : index
    %c0_12 = arith.constant 0 : index
    %31 = vector.load %arg5[%c32, %c0_12] : memref<47x128xf32, #tpu.memory_space<vmem>>, vector<15x128xf32>
    %cst_13 = arith.constant dense<0.000000e+00> : vector<2x128xf32>
    %32 = tpu.matmul %28, %31, %cst_13 {dimension_numbers = #tpu.dot_dimension_numbers<[1], [0], [0], [1], [0, 0, 1, 1], [], []>} : vector<2x15xf32>, vector<15x128xf32>, vector<2x128xf32> -> vector<2x128xf32>
    %33 = arith.addf %30, %32 : vector<2x128xf32>
    %c0_14 = arith.constant 0 : index
    %c0_15 = arith.constant 0 : index
    %34 = vector.load %arg6[%c0_14, %c0_15] : memref<1x128xf32, #tpu.memory_space<vmem>>, vector<1x128xf32>
    %35 = vector.broadcast %34 : vector<1x128xf32> to vector<2x128xf32>
    %36 = arith.addf %33, %35 : vector<2x128xf32>
    %37 = vector.extract_strided_slice %36 {offsets = [0, 0], sizes = [2, 32], strides = [1, 1]} : vector<2x128xf32> to vector<2x32xf32>
    %38 = vector.shape_cast %37 : vector<2x32xf32> to vector<2x1x32xf32>
    %c0_16 = arith.constant 0 : index
    %c0_17 = arith.constant 0 : index
    %c0_18 = arith.constant 0 : index
    %39 = vector.load %arg7[%c0_16, %c0_17, %c0_18] : memref<2x1x32xf32, #tpu.memory_space<vmem>>, vector<2x1x32xf32>
    tpu.vector_store %arg7[%c0_16, %c0_17, %c0_18], %38 {strides = array<i32>} : memref<2x1x32xf32, #tpu.memory_space<vmem>>, vector<2x1x32xf32>,
    %40 = vector.extract_strided_slice %36 {offsets = [0, 32], sizes = [2, 32], strides = [1, 1]} : vector<2x128xf32> to vector<2x32xf32>
    %c0_19 = arith.constant 0 : index
    %c0_20 = arith.constant 0 : index
    %c0_21 = arith.constant 0 : index
    %41 = vector.load %arg8[%c0_19, %c0_20, %c0_21] : memref<2x3x32xf32, #tpu.memory_space<vmem>>, vector<2x1x32xf32>
    %42 = vector.shape_cast %41 : vector<2x1x32xf32> to vector<2x32xf32>
    %43 = vector.shape_cast %40 : vector<2x32xf32> to vector<2x1x32xf32>
    tpu.vector_store %arg8[%c0_19, %c0_20, %c0_21], %43 {strides = array<i32>} : memref<2x3x32xf32, #tpu.memory_space<vmem>>, vector<2x1x32xf32>,
    %44 = vector.extract_strided_slice %36 {offsets = [0, 64], sizes = [2, 32], strides = [1, 1]} : vector<2x128xf32> to vector<2x32xf32>
    %c0_22 = arith.constant 0 : index
    %c1 = arith.constant 1 : index
    %c0_23 = arith.constant 0 : index
    %45 = vector.load %arg8[%c0_22, %c1, %c0_23] : memref<2x3x32xf32, #tpu.memory_space<vmem>>, vector<2x1x32xf32>
    %46 = vector.shape_cast %45 : vector<2x1x32xf32> to vector<2x32xf32>
    %47 = vector.shape_cast %44 : vector<2x32xf32> to vector<2x1x32xf32>
    tpu.vector_store %arg8[%c0_22, %c1, %c0_23], %47 {strides = array<i32>} : memref<2x3x32xf32, #tpu.memory_space<vmem>>, vector<2x1x32xf32>,
    %48 = vector.extract_strided_slice %36 {offsets = [0, 96], sizes = [2, 32], strides = [1, 1]} : vector<2x128xf32> to vector<2x32xf32>
    %c0_24 = arith.constant 0 : index
    %c2 = arith.constant 2 : index
    %c0_25 = arith.constant 0 : index
    %49 = vector.load %arg8[%c0_24, %c2, %c0_25] : memref<2x3x32xf32, #tpu.memory_space<vmem>>, vector<2x1x32xf32>
    %50 = vector.shape_cast %49 : vector<2x1x32xf32> to vector<2x32xf32>
    %51 = vector.shape_cast %48 : vector<2x32xf32> to vector<2x1x32xf32>
    tpu.vector_store %arg8[%c0_24, %c2, %c0_25], %51 {strides = array<i32>} : memref<2x3x32xf32, #tpu.memory_space<vmem>>, vector<2x1x32xf32>,
    return
  }
  func.func @transform_0(%arg0: i32) -> (i32, i32) {
    %c0_i32 = arith.constant 0 : i32
    %c0_i32_0 = arith.constant 0 : i32
    return %arg0, %c0_i32 : i32, i32
  }
  func.func @transform_1(%arg0: i32) -> (i32, i32) {
    %c0_i32 = arith.constant 0 : i32
    %c0_i32_0 = arith.constant 0 : i32
    return %arg0, %c0_i32 : i32, i32
  }
  func.func @transform_2(%arg0: i32) -> (i32, i32) {
    %c0_i32 = arith.constant 0 : i32
    %c0_i32_0 = arith.constant 0 : i32
    %c0_i32_1 = arith.constant 0 : i32
    return %c0_i32, %c0_i32_0 : i32, i32
  }
  func.func @transform_3(%arg0: i32) -> (i32, i32) {
    %c0_i32 = arith.constant 0 : i32
    %c0_i32_0 = arith.constant 0 : i32
    %c0_i32_1 = arith.constant 0 : i32
    return %c0_i32, %c0_i32_0 : i32, i32
  }
  func.func @transform_4(%arg0: i32) -> (i32, i32) {
    %c0_i32 = arith.constant 0 : i32
    %c0_i32_0 = arith.constant 0 : i32
    %c0_i32_1 = arith.constant 0 : i32
    return %c0_i32, %c0_i32_0 : i32, i32
  }
  func.func @transform_5(%arg0: i32) -> (i32, i32) {
    %c0_i32 = arith.constant 0 : i32
    %c0_i32_0 = arith.constant 0 : i32
    %c0_i32_1 = arith.constant 0 : i32
    return %c0_i32, %c0_i32_0 : i32, i32
  }
  func.func @transform_6(%arg0: i32) -> (i32, i32, i32) {
    %c0_i32 = arith.constant 0 : i32
    %c0_i32_0 = arith.constant 0 : i32
    %c0_i32_1 = arith.constant 0 : i32
    return %arg0, %c0_i32, %c0_i32_0 : i32, i32, i32
  }
  func.func @transform_7(%arg0: i32) -> (i32, i32, i32) {
    %c0_i32 = arith.constant 0 : i32
    %c0_i32_0 = arith.constant 0 : i32
    %c0_i32_1 = arith.constant 0 : i32
    return %arg0, %c0_i32, %c0_i32_0 : i32, i32, i32
  }
}

</mosaic_0001>

<bundles_post_ra>
// kernel: tokenizer_fused.1
= control target key start
LH: loop header
LB: loop body
LE: loop exit
PB: predicated region body
PF: predicated region fallthrough
CT: control target
= control target key end

     0   :  { %13 = vsyncpa [#allocation3], 0  ;;  %s646_s0 = inlined_call_operand.vmem [shape: f32[2,4], index: 0, kind: input, shape index: {}]   ;;  %s647_s1 = inlined_call_operand.vmem [shape: s32[2,3], index: 1, kind: input, shape index: {}]   ;;  %s648_s2 = inlined_call_operand.vmem [shape: f32[4,32], index: 2, kind: input, shape index: {}]   ;;  %s649_s3 = inlined_call_operand.vmem [shape: f32[1,32], index: 3, kind: input, shape index: {}]   ;;  %s650_s4 = inlined_call_operand.hbm [shape: f32[47,128], index: 4, kind: input, shape index: {}]   ;;  %s651_s5 = inlined_call_operand.vmem [shape: f32[1,128], index: 5, kind: input, shape index: {}]   ;;  %s652_s6 = inlined_call_operand.hbm [shape: f32[2,1,32], index: 6, kind: output, shape index: {0}]   ;;  %s653_s7 = inlined_call_operand.vmem [shape: f32[2,3,32], index: 7, kind: output, shape index: {1}]  }
   0x1   :  { %14 = vsyncpa [#allocation4], 0  ;;  %s521_s24 = smov [#allocation2]   ;;  %s473_s28 = scalar_lea.hbm %s650_s4, 768 }
   0x2   :  { %s28_s25 = sshll.u32 %s521_s24, 4  ;;  %p474_p0 = scmp.ne.s32.totalorder %s650_s4, %s473_s28  ;;  %s29_s25 = int_to_ptr.vmem [resolvable:$true] %s28_s25 }
   0x3   :  { %p477_p1 = scmp.lt.u32.totalorder %s473_s28, %s650_s4 }
   0x5   :  { %p479_p2 = pnand %p477_p1, %p474_p0 }
   0x7   :  { %482 = shalt.err (!%p479_p2)
}
   0x8   :  { %s483_s10 = scalar_lea.vmem %s29_s25, 768  ;;  %p488_p4 = scmp.lt.s32.totalorder %s29_s25, %s29_s25 }
   0x9   :  { %p484_p3 = scmp.ne.s32.totalorder %s29_s25, %s483_s10  ;;  %p489_p5 = scmp.lt.s32.totalorder %s483_s10, %s483_s10 }
   0xb   :  { %p490_p6 = por %p489_p5, %p488_p4 }
   0xd   :  { %p491_p7 = pnand %p490_p6, %p484_p3 }
   0xf   :  { %494 = shalt.err (!%p491_p7)
}
  0x10   :  { %s522_s11 = smov 128   ;;  %s523_s12 = smov 8  }
  0x11   :  { %34 = dma.hbm_to_vmem [thread:$0]  %s650_s4, 768, %s29_s25, [#allocation3], %s522_s11, %s522_s11, %s523_s12  }
  0x12   :  { %517 = dma.done.wait [#allocation3], 768  }
  0x13   :  { %518 = vsyncadd [#allocation3], 4294966528  ;;  %v524_v0 = vmov 0.0   ;;  %vm525_vm0 = vmmov 0   ;;  %v526_v1 = vmov 0   ;;  %v527_v2 = vmov 2  }
  0x14   :  { %419 = vmatprep.subr.mxu1 %v524_v0  ;;  %421 = vmatprep.mubr.msk.f32.mxu1 %vm525_vm0, %v524_v0  ;;  %vm53_vm1 = vcmask 1043456   ;;  %vm49_vm2 = vcmask 31744   ;;  %v41_v3 = vld [vmem:[%s648_s2] sm:$0xf]  ;;  %v528_v6 = vmov 1   ;;  %vm162_vm3 = vcmask 1046528  }
  0x15   :  { %469 = vset.pattern.permute.xlu0 %v526_v1  ;;  %471 = vset.pattern.permute.xlu1 %v527_v2  ;;  %v40_v4 = vld [vmem:[%s646_s0] sm:$0x3]  ;;  %v157_v8 = vld [vmem:[#allocation2 + $0x28] sm:$0x7f]  ;;  %v529_v9 = vmov 0.0|0.0   ;;  %vm530_vm4 = vmmov 1   ;;  %v128_v17 = vlaneseq }
  0x16   :  { %439 = vmatprep.mubr.msk.f32.mxu0 %vm525_vm0, %v524_v0  ;;  %v130_v5 = vld [vmem:[%s647_s1] sm:$0x3]  ;;  %420 = vmatpush3.msk.msra.mxu1 %vm53_vm1, %v41_v3  ;;  %vm444_vm5 = vmpackc.low %vm162_vm3, %vm530_vm4  ;;  %v153_v12 = vld [vmem:[#allocation2 + $0x8] sm:$0xff]  ;;  %vm158_vm9 = vcmask 121856   ;;  %vm236_vm10 = vcmask 261120   ;;  %vm343_vm11 = vcmask 253952  }
  0x17   :  { %132 = vperm.xlu0 %469, %v130_v5   ;;  %422 = vmatmul.mubr.msk.f32.vlgmr.msra.gmra.mrb[0].mxu1 %vm49_vm2, %v40_v4  ;;  %v156_v7 = vld [vmem:[#allocation2 + $0x20] sm:$0xff]  ;;  %v154_v14 = vld [vmem:[#allocation2 + $0x10] sm:$0xff]  ;;  %v155_v15 = vld [vmem:[#allocation2 + $0x18] sm:$0xff]  ;;  %v129_v18 = vand.u32 127, %v128_v17  ;;  %v531_v34 = vmov 1966171168  }
  0x18   :  { %146 = vperm.xlu1 %471, %v130_v5   ;;  %428 = vmatprep.mubr.msk.f32.mxu1 %vm525_vm0, %v524_v0  ;;  %v443_v10 = vpack.c.bf16 %v157_v8, %v156_v7  ;;  %v152_v11 = vld [vmem:[#allocation2] sm:$0xff]  ;;  %v450_v16 = vpack.c.bf16 %v155_v15, %v154_v14  ;;  %v320_v35 = vunpack.c.l.s4 %v531_v34  ;;  %v323_v36 = vshrl.u32 %v128_v17, 7  ;;  %s533_s22 = smov 64   ;;  %s534_s23 = smov 96  }
  0x19   :  { %442 = vmatprep.subr.bf16.mxu1 %v529_v9  ;;  %446 = vmatprep.subr.bf16.mxu0 %v529_v9  ;;  %v447_v13 = vpack.c.bf16 %v153_v12, %v152_v11  ;;  %v399_v27 = vld [vmem:[%s649_s3] ss:$0 sm:$0xff]  ;;  %s532_s3 = smov [#allocation5]  }
  0x1a   :  { %445 = vmatpush3.bf16.msk.msra.mxu1 %vm444_vm5, %v443_v10  ;;  %v321_v37 = vunpack.c.0.s8 %v320_v35  ;;  %v408_v39 = vld [vmem:[%s651_s5] ss:$0 sm:$0xff]  ;;  %v348_v45 = vsub.s32 0, %v323_v36  ;;  %s383_s21 = sshll.u32 %s532_s3, 4  ;;  %s384_s21 = int_to_ptr.vmem [resolvable:$true] %s383_s21 }
  0x1b   :  { %470 = vset.pattern.permute.xlu0 %v528_v6  ;;  %448 = vmatpush3.bf16.msra.mxu0 %v447_v13  ;;  %s495_s5 = scalar_lea.vmem %s384_s21, 32  ;;  %p500_p9 = scmp.lt.s32.totalorder %s384_s21, %s384_s21 }
  0x1c   :  { %139 = vperm.xlu0 %470, %v130_v5   ;;  %449 = vmatprep.subr.bf16.mxu0 %v529_v9  ;;  %v324_v41 = vsub.s32 %v321_v37, %v323_v36  ;;  %p496_p8 = scmp.ne.s32.totalorder %s384_s21, %s495_s5  ;;  %p501_p10 = scmp.lt.s32.totalorder %s495_s5, %s495_s5 }
  0x1e   :  { %p502_p11 = por %p501_p10, %p500_p9 }
  0x1f   :  { %451 = vmatpush3.bf16.msra.mxu0 %v450_v16 }
  0x20   :  { %472 = vset.pattern.permute.xlu0 %v527_v2  ;;  %p503_p12 = pnand %p502_p11, %p496_p8 }
  0x96   :  { %v133_v19 = vpop.permute.xlu0 %132 }
  0x97   :  { %v147_v20 = vpop.permute.xlu1 %146  ;;  %vm134_vm6 = vcmp.eq.s32.totalorder %v129_v18, %v133_v19 }
  0x98   :  { %vm148_vm7 = vcmp.eq.s32.totalorder %v129_v18, %v147_v20  ;;  %v402_v21 = vsel %vm134_vm6, 1.0, %v524_v0 }
  0x99   :  { %v404_v24 = vsel %vm148_vm7, 1.0, %v524_v0 }
  0x9b   :  { %v140_v22 = vpop.permute.xlu0 %139 }
  0x9c   :  { %vm141_vm8 = vcmp.eq.s32.totalorder %v129_v18, %v140_v22 }
  0x9d   :  { %v403_v23 = vsel %vm141_vm8, 1.0, %v524_v0 }
  0x9e   :  { %v144_v25 = vadd.f32 %v403_v23, %v402_v21 }
  0xa0   :  { %v151_v26 = vadd.f32 %v404_v24, %v144_v25 }
  0xa2   :  { %429 = vmatmul.mubr.msk.f32.vlgmr.msra.gmra.mrb[2].mxu1 %vm158_vm9, %v151_v26 }
  0xea   :  { %v123_v28 = vpop.f32.mrb[0].mxu1 }
  0xeb   :  { %v124_v29 = vadd.f32 %v399_v27, %v123_v28  ;;  %v423_v30 = vpop.f32.mrb[1].mxu1 }
  0xed   :  { %v127_v31 = vmax.f32 %v124_v29, 0.0 }
  0xef   :  { %440 = vmatmul.mubr.msk.f32.vlgmr.msra.gmra.mrb[0].mxu0 %vm236_vm10, %v127_v31 }
 0x175   :  { %v232_v32 = vpop.f32.mrb[2].mxu1 }
 0x176   :  { %v430_v33 = vpop.f32.mrb[3].mxu1 }
 0x1c2   :  { %v306_v38 = vpop.f32.mrb[0].mxu0 }
 0x1c3   :  { %v307_v40 = vadd.f32 %v306_v38, %v232_v32  ;;  %v441_v42 = vpop.f32.mrb[1].mxu0 }
 0x1c5   :  { %v317_v43 = vadd.f32 %v408_v39, %v307_v40 }
 0x1c7   :  { %v325_v44 = vrot.slane %v317_v43, %v324_v41 }
 0x1c9   :  { %v326_v46 = vcombine.high %v325_v44, %v325_v44  ;;  %v333_v47 = vrot.slane %v325_v44, %v324_v41 }
 0x1cb   :  { %v349_v48 = vrot.slane %v333_v47, %v348_v45  ;;  %v340_v49 = vrot.slane %v326_v46, %v324_v41  ;;  %344 = vst.msk [vmem:[#allocation5] sm:$0x1] %vm343_vm11, %v333_v47 }
 0x1cd   :  { %362 = vrot.lane.b32.xlu0 %v349_v48, %s533_s22  ;;  %354 = vrot.lane.b32.xlu1 %v349_v48, %s534_s23  ;;  %v353_v50 = vrot.slane %v340_v49, %v348_v45  ;;  %345 = vst.msk [vmem:[#allocation5 + $0x1] sm:$0x1] %vm343_vm11, %v340_v49 }
 0x1ce   :  { %506 = shalt.err (!%p503_p12)
}
 0x1cf   :  { %s507_s26 = scalar_lea.hbm %s652_s6, 32 }
 0x1d0   :  { %p508_p13 = scmp.ne.s32.totalorder %s652_s6, %s507_s26  ;;  %p511_p0 = scmp.lt.u32.totalorder %s507_s26, %s652_s6 }
 0x1d2   :  { %p513_p1 = pnand %p511_p0, %p508_p13 }
 0x1d4   :  { %516 = shalt.err (!%p513_p1)
}
 0x1d5   :  { %s535_s8 = smov 16   ;;  %s536_s9 = smov 1   ;;  %356 = vrot.lane.b32.xlu1 %v353_v50, %s534_s23 }
 0x1d6   :  { %389 = dma.vmem_to_hbm [thread:$0]  %s384_s21, 32, %s652_s6, [#allocation4], %s535_s8, %s535_s8, %s536_s9  }
 0x1d7   :  { %s537_s12 = smov 32  }
 0x1d8   :  { %370 = vrot.lane.b32.xlu0 %v349_v48, %s537_s12 }
 0x1d9   :  { %364 = vrot.lane.b32.xlu1 %v353_v50, %s533_s22 }
 0x1dd   :  { %372 = vrot.lane.b32.xlu1 %v353_v50, %s537_s12 }
 0x23f   :  { %v363_v51 = vpop.permute.xlu0 %362  ;;  %v355_v52 = vpop.permute.xlu1 %354 }
 0x240   :  { %368 = vst.msk [vmem:[%s653_s7 + $0x1] sm:$0x1] %vm343_vm11, %v363_v51  ;;  %360 = vst.msk [vmem:[%s653_s7] sm:$0x1] %vm343_vm11, %v355_v52 }
 0x247   :  { %v357_v54 = vpop.permute.xlu1 %356 }
 0x248   :  { %361 = vst.msk [vmem:[%s653_s7 + $0x4] sm:$0x1] %vm343_vm11, %v357_v54 }
 0x24a   :  { %v371_v53 = vpop.permute.xlu0 %370 }
 0x24b   :  { %376 = vst.msk [vmem:[%s653_s7 + $0x2] sm:$0x1] %vm343_vm11, %v371_v53  ;;  %v365_v55 = vpop.permute.xlu1 %364 }
 0x24c   :  { %369 = vst.msk [vmem:[%s653_s7 + $0x5] sm:$0x1] %vm343_vm11, %v365_v55 }
 0x24f   :  { %v373_v56 = vpop.permute.xlu1 %372 }
 0x250   :  { %377 = vst.msk [vmem:[%s653_s7 + $0x6] sm:$0x1] %vm343_vm11, %v373_v56 }
 0x251   :  { %519 = dma.done.wait [#allocation4], 32  }
 0x252   :  { %520 = vsyncadd [#allocation4], 4294967264 }
 0x253   :  { %397 = vsyncpa [#allocation3], 1 }
 0x254   :  { %398 = vsyncpa [#allocation4], 1 }

</bundles_post_ra>
